<compile_context>
chip_gen: v5e
topology: v5e:2x2
jax: 0.10.0
libtpu: 0.0.40
codegen_flags: <defaults>
</compile_context>

<pallas_src>
import jax
import jax.numpy as jnp
from jax.experimental import pallas as pl
from jax.experimental.pallas import tpu as pltpu


def _discriminator_kernel(xd_ref, xc_ref, w1d_ref, w1c_ref, b1_ref,
                          w2_ref, b2_ref, out_ref):
    """One batch tile: tanh(xd@W1d + xc@W1c + b1), then VPU dot with w2, sigmoid."""
    xd = xd_ref[...].astype(jnp.float32)                      # [TB, d_data]
    xc = xc_ref[...].astype(jnp.float32)                      # [TB, d_cond]

    # Layer 1 (MXU): concat is fused as two matmuls against the split W1.
    h = jnp.dot(xd, w1d_ref[...], preferred_element_type=jnp.float32)
    h = h + jnp.dot(xc, w1c_ref[...], preferred_element_type=jnp.float32)
    h = jnp.tanh(h + b1_ref[...])                             # [TB, 50]

    # Layer 2 (VPU multiply + XLU lane-reduce) instead of an N=1 MXU matmul.
    o = jnp.sum(h * w2_ref[...], axis=-1, keepdims=True) + b2_ref[...]   # [TB, 1]

    # TODO(synk): output block stays [TB, 1] (masked lane stores); a lane-dense
    # [1, TB] slab would need a sublane->lane relayout that Mosaic may not lower
    # cleanly, and the writeback is <4% of HBM traffic here.
    out_ref[...] = jax.nn.sigmoid(o).astype(out_ref.dtype)


def _round_up(x, m):
    return (x + m - 1) // m * m


def discriminator_forward(data, cond_info, params, *, block_b=512):
    """data: [B, output_dim], cond_info: [B, cond_dim] -> validity: [B, 1] f32."""
    w1, b1, w2, b2 = params                  # [D,50], [1,50], [50,1], [1,1]
    B, d_data = data.shape
    _, d_cond = cond_info.shape
    hidden = w1.shape[1]

    # Split W1 instead of concatenating the inputs (no extra [B, D] HBM copy).
    w1d = w1[:d_data]                        # [d_data, hidden]
    w1c = w1[d_data:]                        # [d_cond, hidden]
    w2_row = w2.reshape(1, hidden)           # broadcast row for the VPU reduce

    # Batch tile: multiple of 8 sublanes; pad the tail so every tile is full
    # (VMEM refs have no runtime bounds check — never run a partial tile).
    tb = min(block_b, _round_up(B, 8))
    b_pad = _round_up(B, tb)
    if b_pad != B:
        data = jnp.pad(data, ((0, b_pad - B), (0, 0)))
        cond_info = jnp.pad(cond_info, ((0, b_pad - B), (0, 0)))

    out = pl.pallas_call(
        _discriminator_kernel,
        out_shape=jax.ShapeDtypeStruct((b_pad, 1), jnp.float32),
        grid=(b_pad // tb,),
        in_specs=[
            # Streamed, double-buffered batch tiles.
            pl.BlockSpec((tb, d_data), lambda i: (i, 0)),
            pl.BlockSpec((tb, d_cond), lambda i: (i, 0)),
            # Parameters: full-array blocks, DMA'd once, resident across tiles.
            pl.BlockSpec((d_data, hidden), lambda i: (0, 0)),
            pl.BlockSpec((d_cond, hidden), lambda i: (0, 0)),
            pl.BlockSpec((1, hidden), lambda i: (0, 0)),
            pl.BlockSpec((1, hidden), lambda i: (0, 0)),
            pl.BlockSpec((1, 1), lambda i: (0, 0)),
        ],
        out_specs=pl.BlockSpec((tb, 1), lambda i: (i, 0)),
        compiler_params=pltpu.CompilerParams(
            dimension_semantics=("parallel",)),   # megacore sharding on v7x
    )(data, cond_info, w1d, w1c, b1, w2_row, b2)
    return out[:B]


def init_params(key, in_dim, hidden=50, out_dim=1):
    """Mimics torch.nn.Linear default init U(-1/sqrt(fan_in), 1/sqrt(fan_in))."""
    k1, k2, k3, k4 = jax.random.split(key, 4)
    lim1 = 1.0 / jnp.sqrt(jnp.float32(in_dim))
    lim2 = 1.0 / jnp.sqrt(jnp.float32(hidden))
    w1 = jax.random.uniform(k1, (in_dim, hidden), jnp.float32, -lim1, lim1)
    b1 = jax.random.uniform(k2, (1, hidden), jnp.float32, -lim1, lim1)
    w2 = jax.random.uniform(k3, (hidden, out_dim), jnp.float32, -lim2, lim2)
    b2 = jax.random.uniform(k4, (1, out_dim), jnp.float32, -lim2, lim2)
    return w1, b1, w2, b2


def _reference(data, cond_info, params):
    w1, b1, w2, b2 = params
    x = jnp.concatenate([data, cond_info], axis=1).astype(jnp.float32)
    return jax.nn.sigmoid(jnp.tanh(x @ w1 + b1) @ w2 + b2)


if __name__ == "__main__":
    key = jax.random.PRNGKey(0)
    k_data, k_cond, k_param = jax.random.split(key, 3)

    output_dim = 16   # dimension of generated "data"
    cond_dim = 16     # dimension of conditioning info
    params = init_params(k_param, output_dim + cond_dim)

    # Case 1: small batch, single tile.
    batch = 8
    data = jax.random.normal(k_data, (batch, output_dim), jnp.float32)
    cond_info = jax.random.normal(k_cond, (batch, cond_dim), jnp.float32)
    validity = jax.block_until_ready(discriminator_forward(data, cond_info, params))
    ref = _reference(data, cond_info, params)
    assert validity.shape == (batch, 1)
    assert jnp.allclose(validity, ref, atol=1e-5, rtol=1e-5)

    # Case 2: multi-tile grid with a ragged tail (exercises padding + pipeline).
    batch2 = 200
    data2 = jax.random.normal(k_data, (batch2, output_dim), jnp.float32)
    cond2 = jax.random.normal(k_cond, (batch2, cond_dim), jnp.float32)
    validity2 = jax.block_until_ready(
        discriminator_forward(data2, cond2, params, block_b=64))
    ref2 = _reference(data2, cond2, params)
    assert validity2.shape == (batch2, 1)
    assert jnp.allclose(validity2, ref2, atol=1e-5, rtol=1e-5)

    print("KERNEL_OK")
</pallas_src>

<mosaic_0001>
module attributes {stable_mosaic.version = 11 : i64} {
  func.func @_discriminator_kernel(%arg0: i32, %arg1: memref<8x16xf32, #tpu.memory_space<vmem>>, %arg2: memref<8x16xf32, #tpu.memory_space<vmem>>, %arg3: memref<16x50xf32, #tpu.memory_space<vmem>>, %arg4: memref<16x50xf32, #tpu.memory_space<vmem>>, %arg5: memref<1x50xf32, #tpu.memory_space<vmem>>, %arg6: memref<1x50xf32, #tpu.memory_space<vmem>>, %arg7: memref<1x1xf32, #tpu.memory_space<vmem>>, %arg8: memref<8x1xf32, #tpu.memory_space<vmem>>) attributes {dimension_semantics = [#tpu.dimension_semantics<parallel>], iteration_bounds = array<i64: 1>, scalar_prefetch = 0 : i64, scratch_operands = 0 : i64, tpu.core_type = #tpu.core_type<tc>, window_params = [{transform_indices = @transform_0, window_bounds = array<i64: 8, 16>}, {transform_indices = @transform_1, window_bounds = array<i64: 8, 16>}, {pipeline_mode = #tpu.pipeline_mode<synchronous>, transform_indices = @transform_2, window_bounds = array<i64: 16, 50>}, {pipeline_mode = #tpu.pipeline_mode<synchronous>, transform_indices = @transform_3, window_bounds = array<i64: 16, 50>}, {pipeline_mode = #tpu.pipeline_mode<synchronous>, transform_indices = @transform_4, window_bounds = array<i64: 1, 50>}, {pipeline_mode = #tpu.pipeline_mode<synchronous>, transform_indices = @transform_5, window_bounds = array<i64: 1, 50>}, {pipeline_mode = #tpu.pipeline_mode<synchronous>, transform_indices = @transform_6, window_bounds = array<i64: 1, 1>}, {transform_indices = @transform_7, window_bounds = array<i64: 8, 1>}]} {
    %c0 = arith.constant 0 : index
    %c0_0 = arith.constant 0 : index
    %0 = vector.load %arg1[%c0, %c0_0] : memref<8x16xf32, #tpu.memory_space<vmem>>, vector<8x16xf32>
    %c0_1 = arith.constant 0 : index
    %c0_2 = arith.constant 0 : index
    %1 = vector.load %arg2[%c0_1, %c0_2] : memref<8x16xf32, #tpu.memory_space<vmem>>, vector<8x16xf32>
    %c0_3 = arith.constant 0 : index
    %c0_4 = arith.constant 0 : index
    %2 = vector.load %arg3[%c0_3, %c0_4] : memref<16x50xf32, #tpu.memory_space<vmem>>, vector<16x50xf32>
    %cst = arith.constant dense<0.000000e+00> : vector<8x50xf32>
    %3 = tpu.matmul %0, %2, %cst {dimension_numbers = #tpu.dot_dimension_numbers<[1], [0], [0], [1], [0, 0, 1, 1], [], []>} : vector<8x16xf32>, vector<16x50xf32>, vector<8x50xf32> -> vector<8x50xf32>
    %c0_5 = arith.constant 0 : index
    %c0_6 = arith.constant 0 : index
    %4 = vector.load %arg4[%c0_5, %c0_6] : memref<16x50xf32, #tpu.memory_space<vmem>>, vector<16x50xf32>
    %cst_7 = arith.constant dense<0.000000e+00> : vector<8x50xf32>
    %5 = tpu.matmul %1, %4, %cst_7 {dimension_numbers = #tpu.dot_dimension_numbers<[1], [0], [0], [1], [0, 0, 1, 1], [], []>} : vector<8x16xf32>, vector<16x50xf32>, vector<8x50xf32> -> vector<8x50xf32>
    %6 = arith.addf %3, %5 : vector<8x50xf32>
    %c0_8 = arith.constant 0 : index
    %c0_9 = arith.constant 0 : index
    %7 = vector.load %arg5[%c0_8, %c0_9] : memref<1x50xf32, #tpu.memory_space<vmem>>, vector<1x50xf32>
    %8 = vector.broadcast %7 : vector<1x50xf32> to vector<8x50xf32>
    %9 = arith.addf %6, %8 : vector<8x50xf32>
    %10 = math.tanh %9 : vector<8x50xf32>
    %c0_10 = arith.constant 0 : index
    %c0_11 = arith.constant 0 : index
    %11 = vector.load %arg6[%c0_10, %c0_11] : memref<1x50xf32, #tpu.memory_space<vmem>>, vector<1x50xf32>
    %12 = vector.broadcast %11 : vector<1x50xf32> to vector<8x50xf32>
    %13 = arith.mulf %10, %12 : vector<8x50xf32>
    %cst_12 = arith.constant dense<0.000000e+00> : vector<8xf32>
    %14 = vector.multi_reduction <add>, %13, %cst_12 [1] : vector<8x50xf32> to vector<8xf32>
    %15 = vector.shape_cast %14 : vector<8xf32> to vector<8x1xf32>
    %c0_13 = arith.constant 0 : index
    %c0_14 = arith.constant 0 : index
    %16 = vector.load %arg7[%c0_13, %c0_14] : memref<1x1xf32, #tpu.memory_space<vmem>>, vector<1x1xf32>
    %17 = vector.broadcast %16 : vector<1x1xf32> to vector<8x1xf32>
    %18 = arith.addf %15, %17 : vector<8x1xf32>
    %19 = arith.negf %18 : vector<8x1xf32>
    %20 = math.exp %19 : vector<8x1xf32>
    %cst_15 = arith.constant 1.000000e+00 : f32
    %21 = vector.broadcast %cst_15 : f32 to vector<8x1xf32>
    %22 = arith.addf %21, %20 : vector<8x1xf32>
    %23 = arith.divf %21, %22 : vector<8x1xf32>
    %c0_16 = arith.constant 0 : index
    %c0_17 = arith.constant 0 : index
    %24 = vector.load %arg8[%c0_16, %c0_17] : memref<8x1xf32, #tpu.memory_space<vmem>>, vector<8x1xf32>
    tpu.vector_store %arg8[%c0_16, %c0_17], %23 {strides = array<i32>} : memref<8x1xf32, #tpu.memory_space<vmem>>, vector<8x1xf32>,
    return
  }
  func.func @transform_0(%arg0: i32) -> (i32, i32) {
    %c0_i32 = arith.constant 0 : i32
    %c0_i32_0 = arith.constant 0 : i32
    return %arg0, %c0_i32 : i32, i32
  }
  func.func @transform_1(%arg0: i32) -> (i32, i32) {
    %c0_i32 = arith.constant 0 : i32
    %c0_i32_0 = arith.constant 0 : i32
    return %arg0, %c0_i32 : i32, i32
  }
  func.func @transform_2(%arg0: i32) -> (i32, i32) {
    %c0_i32 = arith.constant 0 : i32
    %c0_i32_0 = arith.constant 0 : i32
    %c0_i32_1 = arith.constant 0 : i32
    return %c0_i32, %c0_i32_0 : i32, i32
  }
  func.func @transform_3(%arg0: i32) -> (i32, i32) {
    %c0_i32 = arith.constant 0 : i32
    %c0_i32_0 = arith.constant 0 : i32
    %c0_i32_1 = arith.constant 0 : i32
    return %c0_i32, %c0_i32_0 : i32, i32
  }
  func.func @transform_4(%arg0: i32) -> (i32, i32) {
    %c0_i32 = arith.constant 0 : i32
    %c0_i32_0 = arith.constant 0 : i32
    %c0_i32_1 = arith.constant 0 : i32
    return %c0_i32, %c0_i32_0 : i32, i32
  }
  func.func @transform_5(%arg0: i32) -> (i32, i32) {
    %c0_i32 = arith.constant 0 : i32
    %c0_i32_0 = arith.constant 0 : i32
    %c0_i32_1 = arith.constant 0 : i32
    return %c0_i32, %c0_i32_0 : i32, i32
  }
  func.func @transform_6(%arg0: i32) -> (i32, i32) {
    %c0_i32 = arith.constant 0 : i32
    %c0_i32_0 = arith.constant 0 : i32
    %c0_i32_1 = arith.constant 0 : i32
    return %c0_i32, %c0_i32_0 : i32, i32
  }
  func.func @transform_7(%arg0: i32) -> (i32, i32) {
    %c0_i32 = arith.constant 0 : i32
    %c0_i32_0 = arith.constant 0 : i32
    return %arg0, %c0_i32 : i32, i32
  }
}

</mosaic_0001>

<bundles_post_ra>
// kernel: tpu_custom_call.1
= control target key start
LH: loop header
LB: loop body
LE: loop exit
PB: predicated region body
PF: predicated region fallthrough
CT: control target
= control target key end

     0   :  { %s378_s0 = inlined_call_operand.hbm [shape: f32[8,16], index: 0, kind: input, shape index: {}]   ;;  %s379_s1 = inlined_call_operand.hbm [shape: f32[8,16], index: 1, kind: input, shape index: {}]   ;;  %s380_s2 = inlined_call_operand.hbm [shape: f32[16,50], index: 2, kind: input, shape index: {}]   ;;  %s381_s3 = inlined_call_operand.hbm [shape: f32[16,50], index: 3, kind: input, shape index: {}]   ;;  %s382_s4 = inlined_call_operand.vmem [shape: f32[1,50], index: 4, kind: input, shape index: {}]   ;;  %s383_s5 = inlined_call_operand.vmem [shape: f32[1,50], index: 5, kind: input, shape index: {}]   ;;  %s384_s6 = inlined_call_operand.<no memory space> [shape: f32[1,1], index: 6, kind: input, shape index: {}]   ;;  %s385_s7 = inlined_call_operand.vmem [shape: f32[8,1], index: 7, kind: output, shape index: {}]  }
   0x1   :  { %v12_v0 = vstv %s384_s6 }
   0x2   :  { %13 = vst [vmem:[#allocation2] sm:$0x1] %v12_v0 }
   0x3   :  { %14 = vsyncpa [#allocation4], 0 }
   0x4   :  { %15 = vsyncpa [#allocation6], 0  ;;  %s33_s28 = sshll.u32 %s379_s1, 4  ;;  %s34_s28 = int_to_ptr.hbm [resolvable:$true] %s33_s28 }
   0x5   :  { %16 = vsyncpa [#allocation9], 0  ;;  %s308_s29 = smov [#allocation5]   ;;  %s22_s10 = sshll.u32 %s378_s0, 4  ;;  %s23_s10 = int_to_ptr.hbm [resolvable:$true] %s22_s10 }
   0x6   :  { %s35_s30 = sshll.u32 %s308_s29, 4  ;;  %s309_s11 = smov [#allocation3]   ;;  %s36_s30 = int_to_ptr.vmem [resolvable:$true] %s35_s30 }
   0x7   :  { %38 = dma.hbm_to_vmem [thread:$0]  %s34_s28, 128, %s36_s30, [#allocation6]  }
   0x8   :  { %s24_s6 = sshll.u32 %s309_s11, 4  ;;  %s43_s14 = sshll.u32 %s380_s2, 4  ;;  %s25_s6 = int_to_ptr.vmem [resolvable:$true] %s24_s6  ;;  %s44_s14 = int_to_ptr.hbm [resolvable:$true] %s43_s14 }
   0x9   :  { %27 = dma.hbm_to_vmem [thread:$0]  %s23_s10, 128, %s25_s6, [#allocation4]  }
   0xa   :  { %s310_s1 = smov [#allocation7]   ;;  %s56_s18 = sshll.u32 %s381_s3, 4  ;;  %s57_s18 = int_to_ptr.hbm [resolvable:$true] %s56_s18 }
   0xb   :  { %s45_s15 = sshll.u32 %s310_s1, 4  ;;  %s311_s19 = smov 128   ;;  %s46_s15 = int_to_ptr.vmem [resolvable:$true] %s45_s15 }
   0xc   :  { %s312_s0 = smov 8   ;;  %s313_s20 = smov [#allocation8]  }
   0xd   :  { %51 = dma.hbm_to_vmem [thread:$0]  %s44_s14, 256, %s46_s15, [#allocation6], %s311_s19, %s311_s19, %s312_s0  }
   0xe   :  { %s58_s21 = sshll.u32 %s313_s20, 4  ;;  %s59_s21 = int_to_ptr.vmem [resolvable:$true] %s58_s21 }
   0xf   :  { %64 = dma.hbm_to_vmem [thread:$0]  %s57_s18, 256, %s59_s21, [#allocation9], %s311_s19, %s311_s19, %s312_s0  }
  0x10   :  { %302 = dma.done.wait [#allocation4], 128  }
  0x11   :  { %303 = vsyncadd [#allocation4], 4294967168 }
  0x12   :  { %304 = dma.done.wait [#allocation6], 384  }
  0x13   :  { %305 = vsyncadd [#allocation6], 4294966912 }
  0x14   :  { %306 = dma.done.wait [#allocation9], 256  }
  0x15   :  { %307 = vsyncadd [#allocation9], 4294967040  ;;  %v92_v1 = vld [vmem:[#allocation8 + $0x8] sm:$0xff]  ;;  %v90_v2 = vld [vmem:[#allocation7 + $0x8] sm:$0xff]  ;;  %vm93_vm0 = vcmask 130048   ;;  %vm151_vm1 = vcmask 408576  }
  0x16   :  { %v91_v3 = vld [vmem:[#allocation8] sm:$0xff]  ;;  %111 = vmatpush.msra.mxu0 %v92_v1  ;;  %134 = vmatpush.msra.mxu1 %v90_v2  ;;  %v89_v4 = vld [vmem:[#allocation7] sm:$0xff]  ;;  %v88_v5 = vld [vmem:[#allocation5] sm:$0xff]  ;;  %vm179_vm5 = vcmask 7168  }
  0x17   :  { %v87_v6 = vld [vmem:[#allocation3] sm:$0xff]  ;;  %v197_v7 = vld [vmem:[%s382_s4] ss:$0 sm:$0xff] }
  0x18   :  { %112 = vmatpush.msra.mxu0 %v91_v3  ;;  %135 = vmatpush.msra.mxu1 %v89_v4  ;;  %v198_v12 = vld [vmem:[%s383_s5] ss:$0 sm:$0xff] }
  0x19   :  { %188 = vmatmul.msk.f32.vlgmr.msra.gmra.mxu0 %vm93_vm0, %v88_v5  ;;  %189 = vmatmul.msk.f32.vlgmr.msra.gmra.mxu1 %vm93_vm0, %v87_v6  ;;  %v199_v16 = vld [vmem:[#allocation2] ss:$0 sm:$0xff] }
  0x96   :  { %v114_v8 = vpop.f32.mrf.mxu0  ;;  %v137_v9 = vpop.f32.mrf.mxu1 }
  0x97   :  { %v138_v10 = vadd.f32 %v137_v9, %v114_v8 }
  0x99   :  { %v144_v11 = vadd.f32 %v197_v7, %v138_v10 }
  0x9b   :  { %200 = vtanh.f32 %v144_v11 }
  0xa1   :  { %v201_v13 = vpop.eup %200 }
  0xa2   :  { %v150_v14 = vmul.f32 %v201_v13, %v198_v12 }
  0xa4   :  { %v152_v15 = vsel %vm151_vm1, %v150_v14, 0.0 }
  0xa5   :  { %153 = vadd.xlane.f32.xlu0 %v152_v15 }
 0x118   :  { %v154_v17 = vpop.xlane.xlu0 %153 }
 0x119   :  { %v159_v18 = vadd.f32 %v199_v16, %v154_v17 }
 0x11b   :  { %v190_v19 = vmul.f32 -1.442695, %v159_v18 }
 0x11d   :  { %202 = vpow2.f32 %v190_v19 }
 0x123   :  { %v203_v20 = vpop.eup %202 }
 0x124   :  { %v163_v21 = vadd.f32 1.0, %v203_v20 }
 0x126   :  { %204 = vrcp.f32 %v163_v21  ;;  %v175_v25 = vand.u32 2147483648, %v163_v21  ;;  %v173_v27 = vand.u32 2147483647, %v163_v21  ;;  %vm169_vm3 = vweird.f32 %v163_v21 }
 0x128   :  { %v176_v29 = vor.u32 1.1754944e-38, %v175_v25  ;;  %vm174_vm6 = vcmp.eq.f32.partialorder %v173_v27, 8.507059e+37 }
 0x12c   :  { %v205_v22 = vpop.eup %204 }
 0x12d   :  { %v165_v23 = vmul.f32 %v205_v22, %v163_v21  ;;  %vm170_vm2 = vweird.f32 %v205_v22 }
 0x12e   :  { %vm171_vm4 = vmor %vm169_vm3, %vm170_vm2 }
 0x12f   :  { %v166_v24 = vsub.f32 1.0, %v165_v23 }
 0x131   :  { %v167_v26 = vmul.f32 %v205_v22, %v166_v24 }
 0x133   :  { %v168_v28 = vadd.f32 %v205_v22, %v167_v26 }
 0x135   :  { %v172_v30 = vsel %vm171_vm4, %v205_v22, %v168_v28 }
 0x136   :  { %v177_v31 = vsel %vm174_vm6, %v176_v29, %v172_v30 }
 0x137   :  { %180 = vst.msk [vmem:[%s385_s7] sm:$0xff] %vm179_vm5, %v177_v31 }
 0x138   :  { %185 = vsyncpa [#allocation4], 1 }
 0x139   :  { %186 = vsyncpa [#allocation6], 1 }
 0x13a   :  { %187 = vsyncpa [#allocation9], 1 }

</bundles_post_ra>
